<compile_context>
chip_gen: v7x
topology: tpu7x:2x2x1
jax: 0.10.0
libtpu: 0.0.40
codegen_flags: <defaults>
</compile_context>

<pallas_src>
import jax
import jax.numpy as jnp
from jax.experimental import pallas as pl
from jax.experimental.pallas import tpu as pltpu


# ---------------------------------------------------------------------------
# Kernel
# ---------------------------------------------------------------------------
def _make_attention_kernel(k_actual):
    """Kernel factory; `k_actual` is the un-padded object count (static)."""

    def kernel(v_ref, qb_ref, w1v_ref, w2_ref, out_ref):
        # v_ref   : (TB*Kp, v_dim) bf16  flattened (K-padded) object features
        # qb_ref  : (TB, 1, H)     f32   q @ W1_q + b1 (projected once per batch)
        # w1v_ref : (v_dim, H)     bf16  v-part of the weight-normed layer 1
        # w2_ref  : (1, H)         f32   layer-2 weights (b2 dropped)
        # out_ref : (TB, Kp)       f32   softmax attention weights, lane-dense
        tb, kp = out_ref.shape
        h_dim = w1v_ref.shape[1]

        # Layer 1 (v part): one large bf16 MXU matmul, f32 accumulation.
        hv = jnp.dot(v_ref[...], w1v_ref[...],
                     preferred_element_type=jnp.float32)            # (TB*Kp, H)

        # Kp % 8 == 0 (padded in the wrapper), so each batch owns whole sublane
        # tiles and this reshape is a pure reinterpretation -> no VMEM relayout.
        h = jnp.maximum(hv.reshape(tb, kp, h_dim) + qb_ref[...], 0.0)

        # Layer 2 (H -> 1): VPU multiply + lane (XLU) reduction instead of a
        # width-1 MXU matmul.  Lane-dense (TB, Kp) logits.
        logits = jnp.sum(h * w2_ref[...], axis=-1)

        # Mask the K-padding lanes before the softmax (static branch; padded
        # rows of a ragged last batch tile are discarded by Pallas anyway).
        if k_actual < kp:
            lane = jax.lax.broadcasted_iota(jnp.int32, (tb, kp), 1)
            logits = jnp.where(lane < k_actual, logits, -jnp.inf)

        # Numerically stable softmax over the objects (lane axis).
        m = jnp.max(logits, axis=-1, keepdims=True)
        e = jnp.exp(logits - m)
        denom = jnp.sum(e, axis=-1, keepdims=True)
        out_ref[...] = (e * pl.reciprocal(denom, approx=True)).astype(out_ref.dtype)

    return kernel


# ---------------------------------------------------------------------------
# Sizing helpers
# ---------------------------------------------------------------------------
def _vmem_capacity_bytes():
    """Per-core VMEM capacity; conservative fallback if the query is unavailable."""
    try:
        return int(pltpu.get_tpu_info().vmem_capacity_bytes)
    except Exception:
        return 64 << 20  # v7x per-TensorCore VMEM (smallest of v5e/v6e/v7x)


def _pick_batch_tile(B, Kp, v_dim, H, *, budget_bytes, act_bytes=2, max_rows=2048):
    """Batches per grid step, sized against the per-step VMEM budget."""
    if B <= 8:
        return B  # tiny batch: single step; TB == B satisfies block constraints

    # Resident (single-buffered) weights.
    weight_bytes = v_dim * H * act_bytes + H * 4
    # Per-batch per-step footprint.
    per_b = (2 * Kp * v_dim * act_bytes   # v block, double-buffered, bf16
             + 2 * H * 4                  # qb block, double-buffered, f32
             + 2 * Kp * H * 4             # hv / h f32 intermediates
             + 2 * Kp * 4)                # output block, double-buffered, f32

    tb = max(8, (budget_bytes - weight_bytes) // per_b)   # fit VMEM budget
    tb = min(tb, max(8, max_rows // Kp))                  # cap MXU rows per step
    tb = min(tb, max(8, (pl.cdiv(B, 2) // 8) * 8))        # guarantee >= 2 grid steps
    tb = max(8, (tb // 8) * 8)                            # sublane-aligned out block
    return int(tb)


def _resident_weight_spec(shape):
    """Constant-index weight block; single-buffered (index_map never changes)."""
    idx = lambda b: tuple(0 for _ in shape)
    try:
        return pl.BlockSpec(shape, idx, pipeline_mode=pl.Buffered(1))
    except TypeError:  # older jax without pipeline_mode on BlockSpec
        return pl.BlockSpec(shape, idx)


# ---------------------------------------------------------------------------
# Wrapper
# ---------------------------------------------------------------------------
def prepare_params(params, v_dim):
    """One-time weight preparation, hoisted out of the per-call hot path.

    Folds weight_norm(dim=None) (W = g * V / ||V||_F), splits W1 into its v / q
    halves (so the [v, q] concat never materializes in HBM), transposes to the
    kernel's (in, out) layout and casts the dominant read (W1_v) to bf16.
    b2 is dropped entirely: softmax(logits + c) == softmax(logits).
    """
    w1 = params["g1"] * params["v1"] / jnp.linalg.norm(params["v1"])  # (H, v_dim+q_dim)
    w2 = params["g2"] * params["v2"] / jnp.linalg.norm(params["v2"])  # (1, H)
    return {
        "w1v": jnp.transpose(w1[:, :v_dim]).astype(jnp.bfloat16),     # (v_dim, H)
        "w1q": jnp.transpose(w1[:, v_dim:]).astype(jnp.float32),      # (q_dim, H)
        "b1": params["b1"].astype(jnp.float32),                       # (H,)
        "w2": w2.astype(jnp.float32),                                 # (1, H)
    }


def attention_forward(v, q, prep):
    """v: [B, K, v_dim], q: [B, q_dim] -> softmax attention weights [B, K, 1]."""
    B, K, v_dim = v.shape
    H = prep["w2"].shape[1]

    # Pad K up to a sublane multiple so the in-kernel reshape is layout-free
    # for any object count (e.g. K=36 -> Kp=40); padded lanes are masked.
    Kp = ((K + 7) // 8) * 8
    if Kp != K:
        v = jnp.pad(v, ((0, 0), (0, Kp - K), (0, 0)))

    # Dominant HBM read in bf16 (accumulation stays f32 inside the kernel).
    v2d = v.reshape(B * Kp, v_dim).astype(jnp.bfloat16)

    # q projected once per batch (tiny XLA gemm, b1 folded in); broadcast over
    # the Kp objects inside the kernel -> no (B, Kp, v_dim+q_dim) slab in HBM.
    qb = (q @ prep["w1q"] + prep["b1"]).reshape(B, 1, H).astype(jnp.float32)

    vmem_cap = _vmem_capacity_bytes()
    TB = _pick_batch_tile(B, Kp, v_dim, H, budget_bytes=int(0.55 * vmem_cap))
    grid_b = pl.cdiv(B, TB)

    out2d = pl.pallas_call(
        _make_attention_kernel(K),
        out_shape=jax.ShapeDtypeStruct((B, Kp), jnp.float32),
        grid_spec=pltpu.PrefetchScalarGridSpec(
            num_scalar_prefetch=0,
            grid=(grid_b,),
            in_specs=[
                # TODO(synk): sweep pipeline_mode=pl.Buffered(3) on this v spec
                # for v7x when per-step compute is short (DMA-latency bound).
                pl.BlockSpec((TB * Kp, v_dim), lambda b: (b, 0)),
                pl.BlockSpec((TB, 1, H), lambda b: (b, 0, 0)),
                _resident_weight_spec((v_dim, H)),   # VMEM-resident, single-buffered
                _resident_weight_spec((1, H)),       # VMEM-resident, single-buffered
            ],
            out_specs=pl.BlockSpec((TB, Kp), lambda b: (b, 0)),
        ),
        compiler_params=pltpu.CompilerParams(
            dimension_semantics=("parallel",),        # shard over v7x's 2 TCs
            vmem_limit_bytes=int(0.75 * vmem_cap),    # raise the 16/32 MiB default
        ),
    )(v2d, qb, prep["w1v"], prep["w2"])

    # Lane-dense (B, Kp) inside the kernel; drop K-padding, restore [B, K, 1].
    return out2d[:, :K].reshape(B, K, 1)


# ---------------------------------------------------------------------------
# Pure-JAX reference and test harness
# ---------------------------------------------------------------------------
def _reference_forward(v, q, params):
    """Pure-JAX reference matching the PyTorch module (f32 throughout)."""
    w1 = params["g1"] * params["v1"] / jnp.linalg.norm(params["v1"])
    w2 = params["g2"] * params["v2"] / jnp.linalg.norm(params["v2"])
    B, K, _ = v.shape
    q_rep = jnp.broadcast_to(q[:, None, :], (B, K, q.shape[1]))
    vq = jnp.concatenate([v, q_rep], axis=2)
    h = jnp.maximum(jnp.einsum("bkd,hd->bkh", vq, w1) + params["b1"], 0.0)
    logits = jnp.einsum("bkh,oh->bko", h, w2) + params["b2"]
    return jax.nn.softmax(logits, axis=1)


def init_params(key, v_dim, q_dim, num_hid):
    D = v_dim + q_dim
    k1, k2, k3, k4 = jax.random.split(key, 4)
    v1 = jax.random.normal(k1, (num_hid, D), jnp.float32) * 0.1
    v2 = jax.random.normal(k2, (1, num_hid), jnp.float32) * 0.1
    return {
        "v1": v1,
        "g1": jnp.linalg.norm(v1),                 # weight_norm(dim=None) g init
        "b1": jax.random.normal(k3, (num_hid,), jnp.float32) * 0.05,
        "v2": v2,
        "g2": jnp.linalg.norm(v2),
        "b2": jax.random.normal(k4, (1,), jnp.float32) * 0.05,
    }


if __name__ == "__main__":
    v_dim, q_dim, num_hid = 16, 32, 32
    key = jax.random.PRNGKey(0)
    kp_, k1, k2, k3, k4 = jax.random.split(key, 5)
    params = init_params(kp_, v_dim, q_dim, num_hid)

    prep = prepare_params(params, v_dim)          # hoisted weight preparation
    fwd = jax.jit(attention_forward)

    # Tolerance covers bf16 inputs on the layer-1 matmul and the approximate
    # (EUP) reciprocal in the softmax; a layout/indexing bug would be orders of
    # magnitude off.
    ATOL = RTOL = 1e-2

    # Case 1: K a multiple of 8 (no padding path).
    B, K = 2, 8
    v = jax.random.normal(k1, (B, K, v_dim), jnp.float32)
    q = jax.random.normal(k2, (B, q_dim), jnp.float32)
    out = jax.block_until_ready(fwd(v, q, prep))
    ref = jax.block_until_ready(_reference_forward(v, q, params))
    assert out.shape == (B, K, 1)
    assert jnp.allclose(out, ref, atol=ATOL, rtol=RTOL), "mismatch vs reference (K=8)"

    # Case 2: K NOT a multiple of 8 -> exercises the K-padding + -inf masking.
    B2, K2 = 4, 6
    v2 = jax.random.normal(k3, (B2, K2, v_dim), jnp.float32)
    q2 = jax.random.normal(k4, (B2, q_dim), jnp.float32)
    out2 = jax.block_until_ready(fwd(v2, q2, prep))
    ref2 = jax.block_until_ready(_reference_forward(v2, q2, params))
    assert out2.shape == (B2, K2, 1)
    assert jnp.allclose(out2, ref2, atol=ATOL, rtol=RTOL), "mismatch vs reference (K=6)"

    print("KERNEL_OK")
</pallas_src>

<mosaic_0001>
module attributes {stable_mosaic.version = 11 : i64} {
  func.func @kernel(%arg0: i32, %arg1: memref<16x16xbf16, #tpu.memory_space<vmem>>, %arg2: memref<2x1x32xf32, #tpu.memory_space<vmem>>, %arg3: memref<16x32xbf16, #tpu.memory_space<vmem>>, %arg4: memref<1x32xf32, #tpu.memory_space<vmem>>, %arg5: memref<2x8xf32, #tpu.memory_space<vmem>>) attributes {dimension_semantics = [#tpu.dimension_semantics<parallel>], iteration_bounds = array<i64: 1>, scalar_prefetch = 0 : i64, scratch_operands = 0 : i64, tpu.core_type = #tpu.core_type<tc>, window_params = [{transform_indices = @transform_0, window_bounds = array<i64: 16, 16>}, {transform_indices = @transform_1, window_bounds = array<i64: 2, 1, 32>}, {pipeline_mode = #tpu.pipeline_mode<synchronous>, transform_indices = @transform_2, window_bounds = array<i64: 16, 32>}, {pipeline_mode = #tpu.pipeline_mode<synchronous>, transform_indices = @transform_3, window_bounds = array<i64: 1, 32>}, {transform_indices = @transform_4, window_bounds = array<i64: 2, 8>}]} {
    %c0 = arith.constant 0 : index
    %c0_0 = arith.constant 0 : index
    %0 = vector.load %arg1[%c0, %c0_0] : memref<16x16xbf16, #tpu.memory_space<vmem>>, vector<16x16xbf16>
    %c0_1 = arith.constant 0 : index
    %c0_2 = arith.constant 0 : index
    %1 = vector.load %arg3[%c0_1, %c0_2] : memref<16x32xbf16, #tpu.memory_space<vmem>>, vector<16x32xbf16>
    %cst = arith.constant dense<0.000000e+00> : vector<16x32xf32>
    %2 = tpu.matmul %0, %1, %cst {dimension_numbers = #tpu.dot_dimension_numbers<[1], [0], [0], [1], [0, 0, 1, 1], [], []>} : vector<16x16xbf16>, vector<16x32xbf16>, vector<16x32xf32> -> vector<16x32xf32>
    %3 = vector.shape_cast %2 : vector<16x32xf32> to vector<2x8x32xf32>
    %c0_3 = arith.constant 0 : index
    %c0_4 = arith.constant 0 : index
    %c0_5 = arith.constant 0 : index
    %4 = vector.load %arg2[%c0_3, %c0_4, %c0_5] : memref<2x1x32xf32, #tpu.memory_space<vmem>>, vector<2x1x32xf32>
    %5 = vector.broadcast %4 : vector<2x1x32xf32> to vector<2x8x32xf32>
    %6 = arith.addf %3, %5 : vector<2x8x32xf32>
    %cst_6 = arith.constant 0.000000e+00 : f32
    %7 = vector.broadcast %cst_6 : f32 to vector<2x8x32xf32>
    %8 = arith.maximumf %6, %7 : vector<2x8x32xf32>
    %c0_7 = arith.constant 0 : index
    %c0_8 = arith.constant 0 : index
    %9 = vector.load %arg4[%c0_7, %c0_8] : memref<1x32xf32, #tpu.memory_space<vmem>>, vector<1x32xf32>
    %10 = vector.shape_cast %9 : vector<1x32xf32> to vector<1x1x32xf32>
    %11 = vector.broadcast %10 : vector<1x1x32xf32> to vector<2x8x32xf32>
    %12 = arith.mulf %8, %11 : vector<2x8x32xf32>
    %cst_9 = arith.constant dense<0.000000e+00> : vector<2x8xf32>
    %13 = vector.multi_reduction <add>, %12, %cst_9 [2] : vector<2x8x32xf32> to vector<2x8xf32>
    %cst_10 = arith.constant dense<0xFF800000> : vector<2xf32>
    %14 = vector.multi_reduction <maximumf>, %13, %cst_10 [1] : vector<2x8xf32> to vector<2xf32>
    %15 = vector.shape_cast %14 : vector<2xf32> to vector<2x1xf32>
    %16 = vector.broadcast %15 : vector<2x1xf32> to vector<2x8xf32>
    %17 = arith.subf %13, %16 : vector<2x8xf32>
    %18 = math.exp %17 : vector<2x8xf32>
    %cst_11 = arith.constant dense<0.000000e+00> : vector<2xf32>
    %19 = vector.multi_reduction <add>, %18, %cst_11 [1] : vector<2x8xf32> to vector<2xf32>
    %20 = vector.shape_cast %19 : vector<2xf32> to vector<2x1xf32>
    %21 = tpu.reciprocal %20 {approx = true} : vector<2x1xf32> -> vector<2x1xf32>
    %22 = vector.broadcast %21 : vector<2x1xf32> to vector<2x8xf32>
    %23 = arith.mulf %18, %22 : vector<2x8xf32>
    %c0_12 = arith.constant 0 : index
    %c0_13 = arith.constant 0 : index
    %24 = vector.load %arg5[%c0_12, %c0_13] : memref<2x8xf32, #tpu.memory_space<vmem>>, vector<2x8xf32>
    tpu.vector_store %arg5[%c0_12, %c0_13], %23 {strides = array<i32>} : memref<2x8xf32, #tpu.memory_space<vmem>>, vector<2x8xf32>,
    return
  }
  func.func @transform_0(%arg0: i32) -> (i32, i32) {
    %c0_i32 = arith.constant 0 : i32
    %c0_i32_0 = arith.constant 0 : i32
    return %arg0, %c0_i32 : i32, i32
  }
  func.func @transform_1(%arg0: i32) -> (i32, i32, i32) {
    %c0_i32 = arith.constant 0 : i32
    %c0_i32_0 = arith.constant 0 : i32
    %c0_i32_1 = arith.constant 0 : i32
    return %arg0, %c0_i32, %c0_i32_0 : i32, i32, i32
  }
  func.func @transform_2(%arg0: i32) -> (i32, i32) {
    %c0_i32 = arith.constant 0 : i32
    %c0_i32_0 = arith.constant 0 : i32
    %c0_i32_1 = arith.constant 0 : i32
    return %c0_i32, %c0_i32_0 : i32, i32
  }
  func.func @transform_3(%arg0: i32) -> (i32, i32) {
    %c0_i32 = arith.constant 0 : i32
    %c0_i32_0 = arith.constant 0 : i32
    %c0_i32_1 = arith.constant 0 : i32
    return %c0_i32, %c0_i32_0 : i32, i32
  }
  func.func @transform_4(%arg0: i32) -> (i32, i32) {
    %c0_i32 = arith.constant 0 : i32
    %c0_i32_0 = arith.constant 0 : i32
    return %arg0, %c0_i32 : i32, i32
  }
}

</mosaic_0001>

<bundles_post_ra>
// kernel: attention_forward.1
= control target key start
LH: loop header
LB: loop body
LE: loop exit
PB: predicated region body
PF: predicated region fallthrough
CT: control target
= control target key end

     0   :  { %v269_v1 = vmov 0.0   ;;  %vm270_vm0 = vmmov 0   ;;  %vm34_vm1 = vcmask 130048   ;;  %s331_s0 = inlined_call_operand.vmem [shape: bf16[16,16], index: 0, kind: input, shape index: {}]   ;;  %s332_s1 = inlined_call_operand.vmem [shape: f32[2,1,32], index: 1, kind: input, shape index: {}]   ;;  %s333_s2 = inlined_call_operand.vmem [shape: bf16[16,32], index: 2, kind: input, shape index: {}]   ;;  %s334_s3 = inlined_call_operand.vmem [shape: f32[1,32], index: 3, kind: input, shape index: {}]   ;;  %s335_s4 = inlined_call_operand.hbm [shape: f32[2,8], index: 4, kind: output, shape index: {}]  }
   0x1   :  { %v237_v0 = vld [vmem:[%s333_s2] sm:$0xff]   ;;  %225 = vmatprep.subr.bf16.mxu0 %v269_v1  ;;  %227 = vmatprep.mubr.msk.bf16.mxu0 %vm270_vm0, %v269_v1 }
   0x2   :  { %v238_v2 = vld [vmem:[%s331_s0] sm:$0xff]   ;;  %226 = vmatpush3.bf16.msra.mxu0 %v237_v0 }
   0x3   :  { %9 = vsyncpa [#allocation3], 0  ;;  %v220_v3 = vld [vmem:[%s332_s1] ss:$0 sm:$0xff]  ;;  %v221_v5 = vld [vmem:[%s332_s1 + $0x1] ss:$0 sm:$0xff]  ;;  %v115_v18 = vlaneseq }
   0x4   :  { %v222_v9 = vld [vmem:[%s334_s3] ss:$0 sm:$0xff]  ;;  %vm106_vm2 = vcmask 261120   ;;  %vm125_vm3 = vcmask 1041409   ;;  %vm128_vm4 = vcmask 58368   ;;  %v271_v28 = vmov 0  }
   0x5   :  { %228 = vmatmul.mubr.msk.bf16.vlgmr.msra.gmra.mrb[0].mxu0 %vm34_vm1, %v238_v2  ;;  %v116_v19 = vand.u32 127, %v115_v18  ;;  %v118_v20 = vshrl.u32 %v115_v18, 7  ;;  %236 = vset.pattern.permute.xlu0 %v271_v28  ;;  %s272_s1 = smov [#allocation2]  }
   0x6   :  { %235 = vset.pattern.permute.xlu1 %v271_v28  ;;  %s209_s3 = sshll.u32 %s272_s1, 4  ;;  %s210_s3 = int_to_ptr.vmem [resolvable:$true] %s209_s3 }
   0x7   :  { %v119_v22 = vsub.s32 %v116_v19, %v118_v20  ;;  %v135_v29 = vsub.s32 0, %v118_v20  ;;  %v139_v30 = vsub.s32 1, %v118_v20  ;;  %s245_s23 = scalar_lea.vmem %s210_s3, 32  ;;  %p250_p1 = scmp.lt.s32.totalorder %s210_s3, %s210_s3 }
   0x8   :  { %p246_p0 = scmp.ne.s32.totalorder %s210_s3, %s245_s23  ;;  %p251_p2 = scmp.lt.s32.totalorder %s245_s23, %s245_s23 }
   0xa   :  { %p252_p3 = por %p251_p2, %p250_p1 }
   0xc   :  { %p253_p4 = pnand %p252_p3, %p246_p0 }
  0xd8   :  { %v72_v4 = vpop.f32.mrb[0].mxu0 }
  0xd9   :  { %v93_v6 = vadd.f32 %v220_v3, %v72_v4  ;;  %v229_v7 = vpop.f32.mrb[1].mxu0 }
  0xda   :  { %v75_v8 = vpop.f32.mrb[2].mxu0 }
  0xdb   :  { %v95_v10 = vmax.f32 %v93_v6, 0.0  ;;  %v94_v11 = vadd.f32 %v221_v5, %v75_v8  ;;  %v230_v12 = vpop.f32.mrb[3].mxu0 }
  0xdd   :  { %v96_v13 = vmax.f32 %v94_v11, 0.0  ;;  %v104_v14 = vmul.f32 %v222_v9, %v95_v10 }
  0xdf   :  { %v107_v15 = vsel %vm106_vm2, %v104_v14, 0.0  ;;  %v105_v16 = vmul.f32 %v222_v9, %v96_v13 }
  0xe0   :  { %108 = vadd.xlane.f32.xlu0 %v107_v15 }
  0xe1   :  { %v110_v17 = vsel %vm106_vm2, %v105_v16, 0.0 }
  0xe4   :  { %111 = vadd.xlane.f32.xlu0 %v110_v17 }
 0x16d   :  { %v109_v21 = vpop.xlane.xlu0 %108 }
 0x16e   :  { %v120_v24 = vrot.slane %v109_v21, %v119_v22 }
 0x171   :  { %v112_v23 = vpop.xlane.xlu0 %111 }
 0x172   :  { %v124_v25 = vrot.slane %v112_v23, %v119_v22 }
 0x174   :  { %v126_v26 = vsel %vm125_vm3, %v124_v25, %v120_v24 }
 0x175   :  { %v129_v27 = vsel %vm128_vm4, %v126_v26, -inf }
 0x176   :  { %130 = vmax.xlane.f32.xlu1 %v129_v27 }
 0x203   :  { %v131_v31 = vpop.xlane.xlu1 %130 }
 0x204   :  { %v136_v32 = vrot.slane %v131_v31, %v135_v29  ;;  %v140_v33 = vrot.slane %v131_v31, %v139_v30 }
 0x206   :  { %v143_v34 = vsub.f32 %v109_v21, %v136_v32  ;;  %v144_v35 = vsub.f32 %v112_v23, %v140_v33 }
 0x208   :  { %v145_v36 = vmul.f32 1.442695, %v143_v34  ;;  %v147_v37 = vmul.f32 1.442695, %v144_v35 }
 0x20a   :  { %239 = vpow2.f32 %v145_v36 }
 0x20b   :  { %241 = vpow2.f32 %v147_v37 }
 0x214   :  { %v240_v38 = vpop.eup %239 }
 0x215   :  { %v242_v39 = vpop.eup %241  ;;  %152 = vperm.xlu1 %235, %v240_v38  }
 0x216   :  { %155 = vperm.xlu0 %236, %v242_v39  }
 0x294   :  { %v153_v40 = vpop.permute.xlu1 %152 }
 0x295   :  { %v156_v41 = vpop.permute.xlu0 %155  ;;  %v160_v42 = vrot.slane %v153_v40, %v119_v22 }
 0x296   :  { %v164_v43 = vrot.slane %v156_v41, %v119_v22 }
 0x298   :  { %v165_v44 = vsel %vm125_vm3, %v164_v43, %v160_v42 }
 0x299   :  { %v167_v45 = vsel %vm128_vm4, %v165_v44, 0.0 }
 0x29a   :  { %168 = vadd.xlane.f32.xlu1 %v167_v45 }
 0x327   :  { %v169_v46 = vpop.xlane.xlu1 %168 }
 0x328   :  { %243 = vrcp.f32 %v169_v46 }
 0x332   :  { %v244_v47 = vpop.eup %243 }
 0x333   :  { %v175_v48 = vrot.slane %v244_v47, %v135_v29  ;;  %v179_v50 = vrot.slane %v244_v47, %v139_v30 }
 0x335   :  { %v182_v49 = vmul.f32 %v240_v38, %v175_v48  ;;  %v183_v51 = vmul.f32 %v242_v39, %v179_v50 }
 0x337   :  { %187 = vperm.xlu0 %236, %v182_v49  }
 0x33b   :  { %190 = vperm.xlu0 %236, %v183_v51  }
 0x3b6   :  { %v188_v52 = vpop.permute.xlu0 %187 }
 0x3b7   :  { %v195_v54 = vrot.slane %v188_v52, %v119_v22 }
 0x3ba   :  { %v191_v53 = vpop.permute.xlu0 %190 }
 0x3bb   :  { %v199_v55 = vrot.slane %v191_v53, %v119_v22 }
 0x3bd   :  { %v200_v56 = vsel %vm125_vm3, %v199_v55, %v195_v54 }
 0x3be   :  { %202 = vst.msk [vmem:[#allocation2] sm:$0x3] %vm128_vm4, %v200_v56 }
 0x3bf   :  { %256 = shalt.err (!%p253_p4)
}
 0x3c0   :  { %s257_s26 = scalar_lea.hbm %s335_s4, 32 }
 0x3c1   :  { %p258_p5 = scmp.ne.s32.totalorder %s335_s4, %s257_s26  ;;  %p261_p6 = scmp.lt.u32.totalorder %s257_s26, %s335_s4 }
 0x3c3   :  { %p263_p7 = pnand %p261_p6, %p258_p5 }
 0x3c5   :  { %266 = shalt.err (!%p263_p7)
}
 0x3c6   :  { %212 = dma.vmem_to_hbm [thread:$0]  %s210_s3, 32, %s335_s4, [#allocation3]  }
 0x3c7   :  { %267 = dma.done.wait [#allocation3], 32  }
 0x3c8   :  { %268 = vsyncadd [#allocation3], 4294967264 }
 0x3c9   :  { %216 = vsyncpa [#allocation3], 1 }

</bundles_post_ra>
